<compile_context>
chip_gen: v5e
topology: v5e:2x2
jax: 0.10.0
libtpu: 0.0.40
codegen_flags: <defaults>
</compile_context>

<pallas_src>
import math

import jax
import jax.numpy as jnp
from jax.experimental import pallas as pl
from jax.experimental.pallas import tpu as pltpu

_LANE = 128
_SUBLANE = 8


def _round_up(x, m):
    return ((x + m - 1) // m) * m


# ---------------------------------------------------------------------------
# Kernels
# ---------------------------------------------------------------------------
def _sinusoidal_emb_kernel_cols(time_ref, freqs_ref, out_ref):
    """Transposed, lane-dense layout (dim < 128): batch on lanes.

    time_ref : (1, tb)     f32   -- batch tile on the lane axis
    freqs_ref: (half, 1)   f32   -- constant frequency column
    out_ref  : (dim, tb)   f32   -- rows [0,half) = sin, rows [half,dim) = cos
    """
    half = freqs_ref.shape[0]
    args = freqs_ref[...] * time_ref[...]            # (half, tb), one bcast mul
    # Two full-lane-width stores to sublane-aligned halves (no lane masking).
    out_ref[:half, :] = jnp.sin(args)
    out_ref[half:, :] = jnp.cos(args)


def _sinusoidal_emb_kernel_rows(time_ref, freqs_ref, out_ref):
    """Natural layout (dim >= 128): already lane-dense.

    time_ref : (tb, 1)     f32
    freqs_ref: (1, half)   f32
    out_ref  : (tb, dim)   f32
    """
    half = freqs_ref.shape[1]
    args = time_ref[...] * freqs_ref[...]            # (tb, half)
    # sin/cos each over half-width -> EUP work = dim*tb elems (not 2*dim*tb);
    # single full-width store of the concatenated tile.
    out_ref[...] = jnp.concatenate([jnp.sin(args), jnp.cos(args)], axis=-1)


# ---------------------------------------------------------------------------
# Wrapper
# ---------------------------------------------------------------------------
def sinusoidal_position_embeddings(time, dim, *, block_rows=2048, block_cols=4096):
    """time: (B,) or (B, 1) array -> (B, dim) float32 embeddings."""
    assert dim % 2 == 0 and dim >= 4, (
        "dim must be even and >= 4 (half_dim - 1 > 0, same constraint as the "
        "PyTorch original)")
    half = dim // 2

    time_flat = jnp.reshape(time, (-1,)).astype(jnp.float32)
    B = time_flat.shape[0]

    # Frequency table is a compile-time constant -> hoisted out of the kernel.
    scale = -math.log(10000.0) / (half - 1)
    freqs_half = jnp.exp(jnp.arange(half, dtype=jnp.float32) * scale)   # (half,)

    if dim < _LANE:
        # ------- transposed, lane-dense path: batch on the lane axis --------
        padded_B = _round_up(B, _LANE)
        if padded_B >= 512:
            # Give the "parallel" grid >= 2 steps so v7x's 2 TCs both work.
            tb = min(block_cols, _round_up(-(-padded_B // 2), _LANE))
        else:
            tb = min(block_cols, padded_B)
        padded_B = _round_up(padded_B, tb)
        grid = (padded_B // tb,)

        time_row = jnp.pad(time_flat, (0, padded_B - B)).reshape(1, padded_B)
        freqs_col = freqs_half.reshape(half, 1)

        out = pl.pallas_call(
            _sinusoidal_emb_kernel_cols,
            out_shape=jax.ShapeDtypeStruct((dim, padded_B), jnp.float32),
            grid_spec=pltpu.PrefetchScalarGridSpec(
                num_scalar_prefetch=0,
                grid=grid,
                in_specs=[
                    pl.BlockSpec((1, tb), lambda i: (0, i)),      # time (lanes)
                    pl.BlockSpec((half, 1), lambda i: (0, 0)),    # const freqs
                ],
                out_specs=pl.BlockSpec((dim, tb), lambda i: (0, i)),
            ),
            compiler_params=pltpu.CompilerParams(
                dimension_semantics=("parallel",)),
            cost_estimate=pl.CostEstimate(
                flops=padded_B * dim,
                transcendentals=padded_B * dim,
                bytes_accessed=(padded_B + half + padded_B * dim) * 4),
        )(time_row, freqs_col)
        return out[:, :B].T                                       # (B, dim)

    else:
        # ------- natural path: dim >= 128 is already lane-dense -------------
        rounded = _round_up(B, _SUBLANE)
        tb = min(block_rows, rounded)
        if rounded >= 512:
            # >= 2 grid steps when worthwhile (megacore sharding on v7x).
            tb = min(tb, _round_up(-(-rounded // 2), _SUBLANE))
        padded_B = _round_up(rounded, tb)
        grid = (padded_B // tb,)

        time_col = jnp.pad(time_flat, (0, padded_B - B)).reshape(padded_B, 1)
        freqs_row = freqs_half.reshape(1, half)

        out = pl.pallas_call(
            _sinusoidal_emb_kernel_rows,
            out_shape=jax.ShapeDtypeStruct((padded_B, dim), jnp.float32),
            grid_spec=pltpu.PrefetchScalarGridSpec(
                num_scalar_prefetch=0,
                grid=grid,
                in_specs=[
                    pl.BlockSpec((tb, 1), lambda i: (i, 0)),      # time tile
                    pl.BlockSpec((1, half), lambda i: (0, 0)),    # const freqs
                ],
                out_specs=pl.BlockSpec((tb, dim), lambda i: (i, 0)),
            ),
            compiler_params=pltpu.CompilerParams(
                dimension_semantics=("parallel",)),
            cost_estimate=pl.CostEstimate(
                flops=padded_B * dim,
                transcendentals=padded_B * dim,
                bytes_accessed=(padded_B + half + padded_B * dim) * 4),
        )(time_col, freqs_row)
        return out[:B]                                            # (B, dim)


# ---------------------------------------------------------------------------
# Pure-JAX reference (mirrors the PyTorch forward exactly)
# ---------------------------------------------------------------------------
def _reference(time, dim):
    time = jnp.reshape(time, (-1,)).astype(jnp.float32)
    half = dim // 2
    emb_scale = math.log(10000.0) / (half - 1)
    freqs = jnp.exp(jnp.arange(half, dtype=jnp.float32) * -emb_scale)
    args = time[:, None] * freqs[None, :]
    return jnp.concatenate([jnp.sin(args), jnp.cos(args)], axis=-1)


if __name__ == "__main__":
    key = jax.random.PRNGKey(0)

    # Case 1: shipped module sizes -> narrow-dim, transposed lane-dense path.
    batch, dim = 8, 32
    t = jax.random.uniform(key, (batch,), dtype=jnp.float32) * 1000.0
    out = jax.block_until_ready(sinusoidal_position_embeddings(t, dim))
    ref = _reference(t, dim)
    assert out.shape == (batch, dim), out.shape
    assert jnp.allclose(out, ref, atol=1e-5, rtol=1e-5), "mismatch (dim=32)"

    # Case 2: typical time-embedding width -> natural (B, dim) lane-dense path
    # (also exercises batch padding: 37 -> 40 rows).
    batch2, dim2 = 37, 128
    t2 = jax.random.uniform(jax.random.PRNGKey(1), (batch2, 1),
                            dtype=jnp.float32) * 1000.0
    out2 = jax.block_until_ready(sinusoidal_position_embeddings(t2, dim2))
    ref2 = _reference(t2, dim2)
    assert out2.shape == (batch2, dim2), out2.shape
    assert jnp.allclose(out2, ref2, atol=1e-5, rtol=1e-5), "mismatch (dim=128)"

    print("KERNEL_OK")
</pallas_src>

<mosaic_0001>
module attributes {stable_mosaic.version = 11 : i64} {
  func.func @_sinusoidal_emb_kernel_cols(%arg0: i32, %arg1: memref<1x128xf32, #tpu.memory_space<vmem>>, %arg2: memref<16x1xf32, #tpu.memory_space<vmem>>, %arg3: memref<32x128xf32, #tpu.memory_space<vmem>>) attributes {dimension_semantics = [#tpu.dimension_semantics<parallel>], iteration_bounds = array<i64: 1>, scalar_prefetch = 0 : i64, scratch_operands = 0 : i64, tpu.core_type = #tpu.core_type<tc>, window_params = [{transform_indices = @transform_0, window_bounds = array<i64: 1, 128>}, {pipeline_mode = #tpu.pipeline_mode<synchronous>, transform_indices = @transform_1, window_bounds = array<i64: 16, 1>}, {transform_indices = @transform_2, window_bounds = array<i64: 32, 128>}]} {
    %c0 = arith.constant 0 : index
    %c0_0 = arith.constant 0 : index
    %0 = vector.load %arg2[%c0, %c0_0] : memref<16x1xf32, #tpu.memory_space<vmem>>, vector<16x1xf32>
    %c0_1 = arith.constant 0 : index
    %c0_2 = arith.constant 0 : index
    %1 = vector.load %arg1[%c0_1, %c0_2] : memref<1x128xf32, #tpu.memory_space<vmem>>, vector<1x128xf32>
    %2 = vector.broadcast %0 : vector<16x1xf32> to vector<16x128xf32>
    %3 = vector.broadcast %1 : vector<1x128xf32> to vector<16x128xf32>
    %4 = arith.mulf %2, %3 : vector<16x128xf32>
    %5 = math.sin %4 : vector<16x128xf32>
    %c0_3 = arith.constant 0 : index
    %c0_4 = arith.constant 0 : index
    %6 = vector.load %arg3[%c0_3, %c0_4] : memref<32x128xf32, #tpu.memory_space<vmem>>, vector<16x128xf32>
    tpu.vector_store %arg3[%c0_3, %c0_4], %5 {strides = array<i32>} : memref<32x128xf32, #tpu.memory_space<vmem>>, vector<16x128xf32>,
    %7 = math.cos %4 : vector<16x128xf32>
    %c16 = arith.constant 16 : index
    %c0_5 = arith.constant 0 : index
    %8 = vector.load %arg3[%c16, %c0_5] : memref<32x128xf32, #tpu.memory_space<vmem>>, vector<16x128xf32>
    tpu.vector_store %arg3[%c16, %c0_5], %7 {strides = array<i32>} : memref<32x128xf32, #tpu.memory_space<vmem>>, vector<16x128xf32>,
    return
  }
  func.func @transform_0(%arg0: i32) -> (i32, i32) {
    %c0_i32 = arith.constant 0 : i32
    %c0_i32_0 = arith.constant 0 : i32
    return %c0_i32, %arg0 : i32, i32
  }
  func.func @transform_1(%arg0: i32) -> (i32, i32) {
    %c0_i32 = arith.constant 0 : i32
    %c0_i32_0 = arith.constant 0 : i32
    %c0_i32_1 = arith.constant 0 : i32
    return %c0_i32, %c0_i32_0 : i32, i32
  }
  func.func @transform_2(%arg0: i32) -> (i32, i32) {
    %c0_i32 = arith.constant 0 : i32
    %c0_i32_0 = arith.constant 0 : i32
    return %c0_i32, %arg0 : i32, i32
  }
}

</mosaic_0001>

<bundles_post_ra>
// kernel: tpu_custom_call.1
= control target key start
LH: loop header
LB: loop body
LE: loop exit
PB: predicated region body
PF: predicated region fallthrough
CT: control target
= control target key end

     0   :  { %v720_v1 = vmov 0   ;;  %s897_s0 = inlined_call_operand.vmem [shape: f32[1,128], index: 0, kind: input, shape index: {}]   ;;  %s898_s1 = inlined_call_operand.vmem [shape: f32[16,1], index: 1, kind: input, shape index: {}]   ;;  %s899_s2 = inlined_call_operand.hbm [shape: f32[32,128], index: 2, kind: output, shape index: {}]  }
   0x1   :  { %v12_v0 = vld [vmem:[%s898_s1] sm:$0xff]  ;;  %692 = vset.pattern.permute.xlu0 %v720_v1 }
   0x2   :  { %17 = vperm.xlu0 %692, %v12_v0  }
   0x3   :  { %7 = vsyncpa [#allocation3], 0  ;;  %v13_v2 = vld [vmem:[%s898_s1 + $0x8] sm:$0xff]  ;;  %v693_v3 = vld [vmem:[%s897_s0] ss:$0 sm:$0xff]  ;;  %s727_s0 = smov [#allocation2]  }
   0x4   :  { %v721_v25 = vmov 683565275   ;;  %v722_v27 = vmov 2475754826   ;;  %v723_v31 = vmov 2131351028  }
   0x5   :  { %v724_v34 = vmov 2102212464   ;;  %v725_v37 = vmov 920167782   ;;  %v726_v40 = vmov 1326507024  }
   0x6   :  { %s656_s1 = sshll.u32 %s727_s0, 4  ;;  %s658_s17 = sshll.u32 %s899_s2, 4  ;;  %s657_s1 = int_to_ptr.vmem [resolvable:$true] %s656_s1  ;;  %s659_s17 = int_to_ptr.hbm [resolvable:$true] %s658_s17 }
   0x7   :  { %s728_s18 = smov 128   ;;  %s729_s2 = smov 8  }
   0xa   :  { %22 = vperm.xlu0 %692, %v13_v2  }
  0x74   :  { %v18_v4 = vpop.permute.xlu0 %17 }
  0x75   :  { %v755_v5 = vmul.f32 %v693_v3, %v18_v4 }
  0x77   :  { %v30_v6 = vand.u32 2147483647, %v755_v5  ;;  %v33_v7 = vand.u32 2139095040, %v755_v5 }
  0x79   :  { %v34_v8 = vshrl.u32 %v33_v7, 23  ;;  %v37_v9 = vand.u32 8388607, %v30_v6 }
  0x7b   :  { %v670_v10 = vadd.s32 4294967169, %v34_v8  ;;  %v38_v11 = vor.u32 8388608, %v37_v9 }
  0x7c   :  { %v23_v12 = vpop.permute.xlu0 %22 }
  0x7d   :  { %v40_v13 = vadd.s32 1, %v670_v10  ;;  %v761_v14 = vmul.f32 %v693_v3, %v23_v12  ;;  %v763_v15 = vshll.u32 %v38_v11, 8 }
  0x7f   :  { %vm41_vm0 = vcmp.gt.s32.totalorder %v40_v13, 0  ;;  %v185_v17 = vand.u32 2147483647, %v761_v14  ;;  %v188_v18 = vand.u32 2139095040, %v761_v14  ;;  %v79_v21 = vand.u32 65535, %v763_v15 }
  0x80   :  { %v42_v16 = vsel %vm41_vm0, %v40_v13, 0  ;;  %v80_v22 = vshrl.u32 %v763_v15, 16 }
  0x81   :  { %v44_v19 = vand.u32 31, %v42_v16  ;;  %v189_v23 = vshrl.u32 %v188_v18, 23  ;;  %v43_v24 = vshrl.u32 %v42_v16, 5  ;;  %v773_v29 = vand.u32 8388607, %v185_v17 }
  0x83   :  { %v45_v20 = vsub.s32 32, %v44_v19  ;;  %v47_v26 = vshll.u32 %v721_v25, %v44_v19  ;;  %v50_v28 = vshll.u32 %v722_v27, %v44_v19  ;;  %v53_v33 = vshll.u32 %v723_v31, %v44_v19 }
  0x84   :  { %v56_v36 = vshll.u32 %v724_v34, %v44_v19  ;;  %v59_v39 = vshll.u32 %v725_v37, %v44_v19  ;;  %v673_v45 = vadd.s32 4294967169, %v189_v23  ;;  %vm62_vm1 = vcmp.lt.s32.totalorder %v43_v24, 1 }
  0x85   :  { %v48_v30 = vshrl.u32 %v722_v27, %v45_v20  ;;  %v51_v32 = vshrl.u32 %v723_v31, %v45_v20  ;;  %v54_v35 = vshrl.u32 %v724_v34, %v45_v20  ;;  %v57_v38 = vshrl.u32 %v725_v37, %v45_v20 }
  0x86   :  { %v60_v41 = vshrl.u32 %v726_v40, %v45_v20  ;;  %vm65_vm2 = vcmp.lt.s32.totalorder %v43_v24, 4  ;;  %v46_v48 = vshrl.u32 %v721_v25, %v45_v20  ;;  %vm64_vm3 = vcmp.lt.s32.totalorder %v43_v24, 3 }
  0x87   :  { %v49_v42 = vor.u32 %v48_v30, %v47_v26  ;;  %v52_v43 = vor.u32 %v51_v32, %v50_v28  ;;  %v55_v44 = vor.u32 %v54_v35, %v53_v33  ;;  %v58_v46 = vor.u32 %v57_v38, %v56_v36 }
  0x88   :  { %v61_v47 = vor.u32 %v60_v41, %v59_v39  ;;  %v195_v54 = vadd.s32 1, %v673_v45  ;;  %vm63_vm4 = vcmp.lt.s32.totalorder %v43_v24, 2  ;;  %v193_v2 = vor.u32 8388608, %v773_v29 }
  0x89   :  { %v67_v49 = vsel %vm65_vm2, %v55_v44, 2102212464  ;;  %v70_v50 = vsel %vm62_vm1, %v49_v42, %v52_v43  ;;  %v74_v51 = vsel %vm62_vm1, %v52_v43, %v55_v44  ;;  %v71_v52 = vsel %vm65_vm2, %v58_v46, 920167782 }
  0x8a   :  { %v75_v53 = vsel %vm65_vm2, %v61_v47, 1326507024  ;;  %v66_v55 = vsel %vm62_vm1, %v46_v48, %v49_v42  ;;  %v72_v56 = vsel %vm64_vm3, %v55_v44, %v71_v52  ;;  %v68_v58 = vsel %vm64_vm3, %v52_v43, %v67_v49 }
  0x8b   :  { %v76_v57 = vsel %vm64_vm3, %v58_v46, %v75_v53  ;;  %v73_v59 = vsel %vm63_vm4, %v70_v50, %v72_v56  ;;  %vm196_vm5 = vcmp.gt.s32.totalorder %v195_v54, 0  ;;  %v785_v3 = vsel %vm63_vm4, %v66_v55, %v68_v58 }
  0x8c   :  { %v77_v60 = vsel %vm63_vm4, %v74_v51, %v76_v57  ;;  %v103_v63 = vand.u32 65535, %v73_v59  ;;  %v104_v0 = vshrl.u32 %v73_v59, 16  ;;  %v197_v8 = vsel %vm196_vm5, %v195_v54, 0 }
  0x8d   :  { %v81_v61 = vand.u32 65535, %v77_v60  ;;  %v82_v62 = vshrl.u32 %v77_v60, 16  ;;  %v199_v30 = vand.u32 31, %v197_v8  ;;  %v792_v41 = vshrl.u32 %v197_v8, 5 }
  0x8e   :  { %v106_v11 = vmul.u32 %v104_v0, %v79_v21  ;;  %v107_v12 = vmul.u32 %v103_v63, %v80_v22  ;;  %v105_v18 = vmul.u32 %v103_v63, %v79_v21  ;;  %v108_v19 = vmul.u32 %v104_v0, %v80_v22 }
  0x8f   :  { %v84_v4 = vmul.u32 %v82_v62, %v79_v21  ;;  %v85_v7 = vmul.u32 %v81_v61, %v80_v22  ;;  %v83_v9 = vmul.u32 %v81_v61, %v79_v21  ;;  %v86_v10 = vmul.u32 %v82_v62, %v80_v22 }
  0x90   :  { %v109_v24 = vshll.u32 %v106_v11, 16  ;;  %v110_v26 = vshrl.u32 %v106_v11, 16  ;;  %v111_v29 = vshll.u32 %v107_v12, 16  ;;  %v112_v33 = vshrl.u32 %v107_v12, 16 }
  0x91   :  { %v87_v13 = vshll.u32 %v84_v4, 16  ;;  %v88_v16 = vshrl.u32 %v84_v4, 16  ;;  %v89_v20 = vshll.u32 %v85_v7, 16  ;;  %v90_v23 = vshrl.u32 %v85_v7, 16 }
  0x92   :  { %vm113_vm7 = vc.u32 %v105_v18, %v109_v24  ;;  %v115_v35 = vadd.s32 %v109_v24, %v105_v18  ;;  %v789_v39 = vsub.s32 32, %v199_v30  ;;  %v202_v45 = vshll.u32 %v721_v25, %v199_v30 }
  0x93   :  { %vm91_vm6 = vc.u32 %v83_v9, %v87_v13  ;;  %v93_v28 = vadd.s32 %v87_v13, %v83_v9  ;;  %v114_v38 = vsel %vm113_vm7, 1, %v720_v1  ;;  %v205_v48 = vshll.u32 %v722_v27, %v199_v30 }
  0x94   :  { %v92_v32 = vsel %vm91_vm6, 1, %v720_v1  ;;  %v116_v22 = vadd.s32 %v114_v38, %v108_v19  ;;  %vm117_vm9 = vc.u32 %v115_v35, %v111_v29  ;;  %v795_v44 = vadd.s32 %v115_v35, %v111_v29 }
  0x95   :  { %v94_v36 = vadd.s32 %v92_v32, %v86_v10  ;;  %vm95_vm8 = vc.u32 %v93_v28, %v89_v20  ;;  %v118_v43 = vsel %vm117_vm9, 1, %v720_v1  ;;  %v203_v47 = vshrl.u32 %v722_v27, %v789_v39 }
  0x96   :  { %v96_v21 = vsel %vm95_vm8, 1, %v720_v1  ;;  %v120_v46 = vadd.s32 %v118_v43, %v116_v22  ;;  %v206_v49 = vshrl.u32 %v723_v31, %v789_v39  ;;  %v208_v51 = vshll.u32 %v723_v31, %v199_v30 }
  0x97   :  { %v98_v42 = vadd.s32 %v96_v21, %v94_v36  ;;  %v209_v52 = vshrl.u32 %v724_v34, %v789_v39  ;;  %v211_v53 = vshll.u32 %v724_v34, %v199_v30  ;;  %v807_v55 = vor.u32 %v203_v47, %v202_v45 }
  0x98   :  { %v121_v54 = vadd.s32 %v120_v46, %v110_v26  ;;  %v809_v56 = vor.u32 %v206_v49, %v205_v48  ;;  %v212_v57 = vshrl.u32 %v725_v37, %v789_v39  ;;  %v214_v59 = vshll.u32 %v725_v37, %v199_v30 }
  0x99   :  { %v99_v50 = vadd.s32 %v98_v42, %v88_v16  ;;  %v815_v58 = vor.u32 %v209_v52, %v208_v51  ;;  %v215_v31 = vshrl.u32 %v726_v40, %v789_v39  ;;  %vm217_vm11 = vcmp.lt.s32.totalorder %v792_v41, 1 }
  0x9a   :  { %v122_v60 = vadd.s32 %v121_v54, %v112_v33  ;;  %v213_v61 = vor.u32 %v212_v57, %v211_v53  ;;  %v823_v62 = vshll.u32 %v193_v2, 8  ;;  %v123_v63 = vmul.u32 %v763_v15, %v785_v3 }
  0x9b   :  { %v813_v27 = vadd.s32 %v99_v50, %v90_v23  ;;  %v216_v34 = vor.u32 %v215_v31, %v214_v59  ;;  %vm220_vm12 = vcmp.lt.s32.totalorder %v792_v41, 4  ;;  %v225_v37 = vsel %vm217_vm11, %v807_v55, %v809_v56 }
  0x9c   :  { %v126_v0 = vadd.s32 1, %v122_v60  ;;  %vm219_vm13 = vcmp.lt.s32.totalorder %v792_v41, 3  ;;  %v226_v40 = vsel %vm220_vm12, %v213_v61, 920167782  ;;  %v229_v2 = vsel %vm217_vm11, %v809_v56, %v815_v58 }
  0x9d   :  { %vm125_vm10 = vc.u32 %v813_v27, %v795_v44  ;;  %v230_v15 = vsel %vm220_vm12, %v216_v34, 1326507024  ;;  %vm218_vm14 = vcmp.lt.s32.totalorder %v792_v41, 2  ;;  %v227_v4 = vsel %vm219_vm13, %v815_v58, %v226_v40 }
  0x9e   :  { %v127_v3 = vsel %vm125_vm10, %v126_v0, %v122_v60  ;;  %v231_v7 = vsel %vm219_vm13, %v213_v61, %v230_v15  ;;  %v228_v9 = vsel %vm218_vm14, %v225_v37, %v227_v4  ;;  %v234_v11 = vand.u32 65535, %v823_v62 }
  0x9f   :  { %v128_v8 = vadd.s32 %v127_v3, %v123_v63  ;;  %v232_v10 = vsel %vm218_vm14, %v229_v2, %v231_v7  ;;  %v235_v12 = vshrl.u32 %v823_v62, 16  ;;  %v259_v18 = vshrl.u32 %v228_v9, 16 }
  0xa0   :  { %v236_v13 = vand.u32 65535, %v232_v10  ;;  %v237_v16 = vshrl.u32 %v232_v10, 16  ;;  %v258_v24 = vand.u32 65535, %v228_v9  ;;  %v201_v31 = vshrl.u32 %v721_v25, %v789_v39 }
  0xa1   :  { %v129_v19 = vadd.s32 536870912, %v128_v8  ;;  %v261_v28 = vmul.u32 %v259_v18, %v234_v11  ;;  %v263_v48 = vmul.u32 %v259_v18, %v235_v12  ;;  %v222_v60 = vsel %vm220_vm12, %v815_v58, 2102212464 }
  0xa2   :  { %v239_v20 = vmul.u32 %v237_v16, %v234_v11  ;;  %v240_v23 = vmul.u32 %v236_v13, %v235_v12  ;;  %v238_v29 = vmul.u32 %v236_v13, %v234_v11  ;;  %v241_v33 = vmul.u32 %v237_v16, %v235_v12 }
  0xa3   :  { %v853_v26 = vshrl.u32 %v129_v19, 30  ;;  %v264_v35 = vshll.u32 %v261_v28, 16  ;;  %v260_v21 = vmul.u32 %v258_v24, %v234_v11  ;;  %v262_v43 = vmul.u32 %v258_v24, %v235_v12 }
  0xa4   :  { %v242_v30 = vshll.u32 %v239_v20, 16  ;;  %v244_v36 = vshll.u32 %v240_v23, 16  ;;  %v243_v54 = vshrl.u32 %v239_v20, 16  ;;  %v245_v34 = vshrl.u32 %v240_v23, 16 }
  0xa5   :  { %v131_v32 = vshll.u32 %v853_v26, 30  ;;  %vm268_vm1 = vc.u32 %v260_v21, %v264_v35  ;;  %v270_v50 = vadd.s32 %v264_v35, %v260_v21  ;;  %v266_v52 = vshll.u32 %v262_v43, 16 }
  0xa6   :  { %vm246_vm15 = vc.u32 %v238_v29, %v242_v30  ;;  %v248_v38 = vadd.s32 %v242_v30, %v238_v29  ;;  %v269_v49 = vsel %vm268_vm1, 1, %v720_v1  ;;  %v265_v37 = vshrl.u32 %v261_v28, 16 }
  0xa7   :  { %v132_v22 = vsub.s32 %v128_v8, %v131_v32  ;;  %v247_v42 = vsel %vm246_vm15, 1, %v720_v1  ;;  %v271_v59 = vadd.s32 %v269_v49, %v263_v48  ;;  %vm272_vm3 = vc.u32 %v270_v50, %v266_v52 }
  0xa8   :  { %v249_v45 = vadd.s32 %v247_v42, %v241_v33  ;;  %vm250_vm0 = vc.u32 %v248_v38, %v244_v36  ;;  %v273_v0 = vsel %vm272_vm3, 1, %v720_v1  ;;  %v221_v2 = vsel %vm217_vm11, %v201_v31, %v807_v55 }
  0xa9   :  { %vm133_vm2 = vcmp.lt.s32.totalorder %v132_v22, 0  ;;  %v134_v46 = vsub.s32 0, %v132_v22  ;;  %v251_v47 = vsel %vm250_vm0, 1, %v720_v1  ;;  %v275_v40 = vadd.s32 %v273_v0, %v271_v59 }
  0xaa   :  { %v253_v57 = vadd.s32 %v251_v47, %v249_v45  ;;  %v223_v25 = vsel %vm219_vm13, %v809_v56, %v222_v60  ;;  %v267_v58 = vshrl.u32 %v262_v43, 16  ;;  %v124_v4 = vadd.s32 %v795_v44, %v813_v27 }
  0xab   :  { %v135_v51 = vsel %vm133_vm2, %v134_v46, %v132_v22  ;;  %v276_v3 = vadd.s32 %v275_v40, %v265_v37  ;;  %v274_v8 = vadd.s32 %v270_v50, %v266_v52  ;;  %v224_v9 = vsel %vm218_vm14, %v221_v2, %v223_v25 }
  0xac   :  { %v136_v53 = vclz %v135_v51  ;;  %v254_v63 = vadd.s32 %v253_v57, %v243_v54  ;;  %v278_v18 = vmul.u32 %v823_v62, %v224_v9  ;;  %vm32_vm6 = vcmp.lt.s32.totalorder %v755_v5, 0 }
  0xad   :  { %v277_v10 = vadd.s32 %v276_v3, %v267_v58  ;;  %vm31_vm7 = vcmp.le.f32.partialorder %v30_v6, 0.7853982  ;;  %v154_v62 = vsub.s32 4, %v853_v26  ;;  %vm173_vm0 = vweird.f32 %v755_v5 }
  0xae   :  { %v671_v61 = vadd.s32 4294967294, %v136_v53  ;;  %v255_v39 = vadd.s32 %v254_v63, %v245_v34  ;;  %vm187_vm1 = vcmp.lt.s32.totalorder %v761_v14, 0  ;;  %vm186_vm2 = vcmp.le.f32.partialorder %v185_v17, 0.7853982 }
  0xaf   :  { %v281_v13 = vadd.s32 1, %v277_v10  ;;  %v155_v21 = vsel %vm32_vm6, %v154_v62, %v853_v26 }
  0xb0   :  { %vm672_vm4 = vcmp.lt.s32.totalorder %v671_v61, 0  ;;  %vm280_vm5 = vc.u32 %v255_v39, %v274_v8  ;;  %v157_v48 = vsel %vm31_vm7, 0, %v155_v21  ;;  %v279_v57 = vadd.s32 %v274_v8, %v255_v39 }
  0xb1   :  { %v139_v15 = vsel %vm672_vm4, 0, %v671_v61  ;;  %v282_v19 = vsel %vm280_vm5, %v281_v13, %v277_v10  ;;  %v174_v53 = vadd.s32 3, %v157_v48  ;;  %v486_v61 = vand.u32 3, %v157_v48 }
  0xb2   :  { %v140_v7 = vsub.s32 32, %v139_v15  ;;  %v144_v1 = vsub.s32 4294967266, %v139_v15  ;;  %v141_v11 = vshll.u32 %v132_v22, %v139_v15  ;;  %v283_v23 = vadd.s32 %v282_v19, %v278_v18 }
  0xb3   :  { %v175_v2 = vand.u32 3, %v174_v53  ;;  %vm487_vm10 = vcmp.lt.s32.totalorder %v486_v61, 2  ;;  %vm488_vm12 = vcmp.eq.s32.totalorder %v486_v61, 0  ;;  %vm491_vm13 = vcmp.eq.s32.totalorder %v486_v61, 2 }
  0xb4   :  { %v142_v55 = vshrl.u32 %v124_v4, %v140_v7  ;;  %v145_v12 = vadd.s32 127, %v144_v1  ;;  %v284_v24 = vadd.s32 536870912, %v283_v23 }
  0xb5   :  { %vm176_vm11 = vcmp.lt.s32.totalorder %v175_v2, 2  ;;  %vm177_vm14 = vcmp.eq.s32.totalorder %v175_v2, 0  ;;  %vm180_vm15 = vcmp.eq.s32.totalorder %v175_v2, 2 }
  0xb6   :  { %v143_v56 = vor.u32 %v142_v55, %v141_v11  ;;  %v146_v16 = vshll.u32 %v145_v12, 23  ;;  %v876_v29 = vshrl.u32 %v284_v24, 30 }
  0xb8   :  { %v147_v20 = vor.u32 4788187, %v146_v16  ;;  %v150_v27 = vcvt.s32.f32 %v143_v56  ;;  %v286_v30 = vshll.u32 %v876_v29, 30 }
  0xba   :  { %v148_v44 = vand.u32 2147483647, %v147_v20  ;;  %v287_v33 = vsub.s32 %v283_v23, %v286_v30  ;;  %v309_v20 = vsub.s32 4, %v876_v29 }
  0xbc   :  { %v151_v28 = vmul.f32 %v150_v27, %v148_v44  ;;  %vm288_vm8 = vcmp.lt.s32.totalorder %v287_v33, 0  ;;  %v289_v38 = vsub.s32 0, %v287_v33  ;;  %v310_v24 = vsel %vm187_vm1, %v309_v20, %v876_v29 }
  0xbd   :  { %v312_v30 = vsel %vm186_vm2, 0, %v310_v24 }
  0xbe   :  { %v152_v41 = vxor.u32 2147483648, %v151_v28  ;;  %v290_v43 = vsel %vm288_vm8, %v289_v38, %v287_v33 }
  0xbf   :  { %v291_v45 = vclz %v290_v43 }
  0xc0   :  { %v153_v32 = vsel %vm32_vm6, %v152_v41, %v151_v28 }
  0xc1   :  { %v156_v35 = vsel %vm31_vm7, %v755_v5, %v153_v32  ;;  %v674_v49 = vadd.s32 4294967294, %v291_v45 }
  0xc2   :  { %v158_v36 = vmul.f32 %v156_v35, %v156_v35 }
  0xc3   :  { %vm675_vm9 = vcmp.lt.s32.totalorder %v674_v49, 0 }
  0xc4   :  { %v159_v22 = vmul.f32 -0.001358992, %v158_v36  ;;  %v166_v42 = vmul.f32 -0.00019511016, %v158_v36  ;;  %v294_v54 = vsel %vm675_vm9, 0, %v674_v49  ;;  %vm328_vm9 = vweird.f32 %v761_v14 }
  0xc5   :  { %v295_v59 = vsub.s32 32, %v294_v54  ;;  %v299_v31 = vsub.s32 4294967266, %v294_v54  ;;  %v296_v34 = vshll.u32 %v287_v33, %v294_v54 }
  0xc6   :  { %v160_v46 = vadd.f32 0.041655596, %v159_v22  ;;  %v167_v47 = vadd.f32 0.008332121, %v166_v42  ;;  %v640_v42 = vand.u32 3, %v312_v30 }
  0xc7   :  { %v297_v63 = vshrl.u32 %v279_v57, %v295_v59  ;;  %v300_v0 = vadd.s32 127, %v299_v31 }
  0xc8   :  { %v161_v6 = vmul.f32 %v160_v46, %v158_v36  ;;  %v168_v50 = vmul.f32 %v167_v47, %v158_v36  ;;  %vm641_vm3 = vcmp.lt.s32.totalorder %v640_v42, 2  ;;  %vm642_vm4 = vcmp.eq.s32.totalorder %v640_v42, 0 }
  0xc9   :  { %v298_v25 = vor.u32 %v297_v63, %v296_v34  ;;  %v301_v15 = vshll.u32 %v300_v0, 23  ;;  %vm645_vm8 = vcmp.eq.s32.totalorder %v640_v42, 2 }
  0xca   :  { %v162_v51 = vadd.f32 -0.4999988, %v161_v6  ;;  %v169_v52 = vadd.f32 -0.16666654, %v168_v50 }
  0xcb   :  { %v302_v4 = vor.u32 4788187, %v301_v15  ;;  %v305_v1 = vcvt.s32.f32 %v298_v25 }
  0xcc   :  { %v163_v60 = vmul.f32 %v162_v51, %v158_v36  ;;  %v170_v26 = vmul.f32 %v169_v52, %v158_v36  ;;  %v329_v36 = vadd.s32 3, %v312_v30 }
  0xcd   :  { %v303_v39 = vand.u32 2147483647, %v302_v4 }
  0xce   :  { %v164_v37 = vadd.f32 1.0, %v163_v60  ;;  %v171_v40 = vadd.f32 1.0, %v170_v26  ;;  %v330_v43 = vand.u32 3, %v329_v36 }
  0xcf   :  { %v306_v13 = vmul.f32 %v305_v1, %v303_v39 }
  0xd0   :  { %v172_v58 = vmul.f32 %v171_v40, %v156_v35  ;;  %v181_v3 = vxor.u32 2147483648, %v164_v37  ;;  %vm331_vm5 = vcmp.lt.s32.totalorder %v330_v43, 2  ;;  %vm332_vm6 = vcmp.eq.s32.totalorder %v330_v43, 0 }
  0xd1   :  { %v307_v18 = vxor.u32 2147483648, %v306_v13  ;;  %vm335_vm7 = vcmp.eq.s32.totalorder %v330_v43, 2 }
  0xd2   :  { %v178_v7 = vxor.u32 2147483648, %v172_v58  ;;  %v182_v9 = vsel %vm180_vm15, %v181_v3, %v172_v58  ;;  %v493_v11 = vsel %vm491_vm13, %v181_v3, %v172_v58 }
  0xd3   :  { %v308_v19 = vsel %vm187_vm1, %v307_v18, %v306_v13 }
  0xd4   :  { %v179_v8 = vsel %vm177_vm14, %v164_v37, %v178_v7  ;;  %v490_v10 = vsel %vm488_vm12, %v164_v37, %v178_v7  ;;  %v311_v23 = vsel %vm186_vm2, %v761_v14, %v308_v19 }
  0xd5   :  { %v183_v55 = vsel %vm176_vm11, %v179_v8, %v182_v9  ;;  %v494_v12 = vsel %vm487_vm10, %v490_v10, %v493_v11  ;;  %v313_v5 = vmul.f32 %v311_v23, %v311_v23 }
  0xd6   :  { %v184_v56 = vsel %vm173_vm0, nan, %v183_v55  ;;  %v495_v16 = vsel %vm173_vm0, nan, %v494_v12 }
  0xd7   :  { %340 = vst [vmem:[#allocation2] sm:$0xff] %v184_v56  ;;  %v314_v44 = vmul.f32 -0.001358992, %v313_v5  ;;  %v321_v27 = vmul.f32 -0.00019511016, %v313_v5 }
  0xd8   :  { %650 = vst [vmem:[#allocation2 + $0x10] sm:$0xff] %v495_v16 }
  0xd9   :  { %v315_v28 = vadd.f32 0.041655596, %v314_v44  ;;  %v322_v41 = vadd.f32 0.008332121, %v321_v27 }
  0xdb   :  { %v316_v32 = vmul.f32 %v315_v28, %v313_v5  ;;  %v323_v62 = vmul.f32 %v322_v41, %v313_v5 }
  0xdd   :  { %v317_v33 = vadd.f32 -0.4999988, %v316_v32  ;;  %v324_v35 = vadd.f32 -0.16666654, %v323_v62 }
  0xdf   :  { %v318_v38 = vmul.f32 %v317_v33, %v313_v5  ;;  %v325_v17 = vmul.f32 %v324_v35, %v313_v5 }
  0xe1   :  { %v319_v21 = vadd.f32 1.0, %v318_v38  ;;  %v326_v22 = vadd.f32 1.0, %v325_v17 }
  0xe3   :  { %v327_v45 = vmul.f32 %v326_v22, %v311_v23  ;;  %v336_v46 = vxor.u32 2147483648, %v319_v21 }
  0xe5   :  { %v333_v47 = vxor.u32 2147483648, %v327_v45  ;;  %v337_v48 = vsel %vm335_vm7, %v336_v46, %v327_v45  ;;  %v647_v6 = vsel %vm645_vm8, %v336_v46, %v327_v45 }
  0xe7   :  { %v334_v29 = vsel %vm332_vm6, %v319_v21, %v333_v47  ;;  %v644_v49 = vsel %vm642_vm4, %v319_v21, %v333_v47 }
  0xe8   :  { %v338_v50 = vsel %vm331_vm5, %v334_v29, %v337_v48  ;;  %v648_v51 = vsel %vm641_vm3, %v644_v49, %v647_v6 }
  0xe9   :  { %v339_v52 = vsel %vm328_vm9, nan, %v338_v50  ;;  %v649_v53 = vsel %vm328_vm9, nan, %v648_v51 }
  0xea   :  { %341 = vst [vmem:[#allocation2 + $0x8] sm:$0xff] %v339_v52 }
  0xeb   :  { %651 = vst [vmem:[#allocation2 + $0x18] sm:$0xff] %v649_v53 }
  0xec   :  { %664 = dma.vmem_to_hbm [thread:$0]  %s657_s1, 512, %s659_s17, [#allocation3], %s728_s18, %s728_s18, %s729_s2  }
  0xed   :  { %718 = dma.done.wait [#allocation3], 512  }
  0xee   :  { %719 = vsyncadd [#allocation3], 4294966784 }
  0xef   :  { %669 = vsyncpa [#allocation3], 1 }

</bundles_post_ra>
